<compile_context>
chip_gen: v5e
topology: v5e:2x2
jax: 0.10.0
libtpu: 0.0.40
codegen_flags: <defaults>
</compile_context>

<pallas_src>
import functools

import jax
import jax.numpy as jnp
from jax import lax
from jax.experimental import pallas as pl
from jax.experimental.pallas import tpu as pltpu


def _mhsa_kernel(x_ref, w1t_ref, w2_ref, out_ref, attn_ref, *, l_chunk, approx_recip):
    # One grid step == `block_b` batch elements.
    x = x_ref[...]                                   # (Bb, L, d_in), x.dtype
    w1t = w1t_ref[...]                               # (d_in, d_hidden), x.dtype
    w2 = w2_ref[...]                                 # (n_head, d_hidden), x.dtype

    bb, seq_len, d_in = x.shape
    n_head = w2.shape[0]
    n_chunks = seq_len // l_chunk

    # --- logits in (n_head, Bb, L): per L-chunk, hidden = tanh(x @ W1^T) on a tall
    #     flattened LHS, then w2 @ hidden^T so the flattened Bb*lc rows land on the
    #     MXU N/lane axis. Only one f32 hidden chunk is live at a time. -------------
    parts = []
    for c in range(n_chunks):
        xc = x[:, c * l_chunk:(c + 1) * l_chunk, :]              # (Bb, lc, d_in)
        x2d = xc.reshape(bb * l_chunk, d_in)                     # (Bb*lc, d_in)
        h = jnp.tanh(
            jnp.dot(x2d, w1t, preferred_element_type=jnp.float32)
        )                                                        # (Bb*lc, d_hidden), f32
        logits_c = lax.dot_general(
            w2, h.astype(x.dtype),                               # A @ B^T form: no big transpose
            dimension_numbers=(((1,), (1,)), ((), ())),
            preferred_element_type=jnp.float32,
        )                                                        # (n_head, Bb*lc), f32
        parts.append(logits_c.reshape(n_head, bb, l_chunk))
    logits_hbl = parts[0] if n_chunks == 1 else jnp.concatenate(parts, axis=-1)
    # Leading-dims permute only (lane axis L unchanged) — no lane<->sublane XLU transpose.
    logits_t = jnp.transpose(logits_hbl, (1, 0, 2))              # (Bb, n_head, L), f32

    # --- softmax over the sequence axis (torch Softmax(dim=1)); L on the lane axis ---
    m = jnp.max(logits_t, axis=-1, keepdims=True)
    e = jnp.exp(logits_t - m)
    denom = jnp.sum(e, axis=-1, keepdims=True)
    attn_t = e * pl.reciprocal(denom, approx=approx_recip)

    # Single cast reused for both the lane-dense store and the final contraction.
    attn_x = attn_t.astype(attn_ref.dtype)
    attn_ref[...] = attn_x                                       # (Bb, n_head, L)

    # --- output[b, h, :] = sum_l attn[b, h, l] * x[b, l, :]  (batched P @ V pattern) --
    out = jnp.einsum(
        "bhl,bld->bhd", attn_x, x, preferred_element_type=jnp.float32,
    )                                                            # (Bb, n_head, d_in)
    out_ref[...] = out.astype(out_ref.dtype)


# ---------------------------------------------------------------------------------
# Generation-aware sizing helpers
# ---------------------------------------------------------------------------------

_H_CHUNK_BUDGET = 4 << 20  # keep the f32 hidden temporary around ~4 MiB per chunk


def _vmem_capacity_bytes():
    try:
        return int(pltpu.get_tpu_info().vmem_capacity_bytes)
    except Exception:
        return 64 << 20  # conservative fallback (v7x-sized VMEM) — safe everywhere


def _is_dual_tensorcore():
    # v7x (and v4/v5p megacore) expose two TensorCores that share the grid via
    # dimension_semantics=("parallel",); v5e/v6e have a single TC.
    try:
        kind = jax.devices()[0].device_kind.lower()
    except Exception:
        return False
    return any(tag in kind for tag in ("v7", "v5p", "v4"))


def _choose_l_chunk(block_b, seq_len, d_hidden, budget=_H_CHUNK_BUDGET):
    """Largest divisor of L whose f32 hidden chunk fits the budget (prefer mult. of 8)."""
    divs = [c for c in range(1, seq_len + 1)
            if seq_len % c == 0 and block_b * c * d_hidden * 4 <= budget]
    if not divs:
        return 1
    aligned = [c for c in divs if c % 8 == 0 or c == seq_len]
    return max(aligned) if aligned else max(divs)


def _vmem_bytes(block_b, seq_len, d_in, d_hidden, n_head, itemsize, l_chunk):
    dbl = 2  # pipelined blocks are double-buffered by default (weights counted too)
    x_blk = dbl * block_b * seq_len * d_in * itemsize
    out_blk = dbl * block_b * n_head * d_in * itemsize
    attn_blk = dbl * block_b * n_head * seq_len * itemsize
    w1 = dbl * d_in * d_hidden * itemsize
    w2 = dbl * n_head * d_hidden * itemsize
    h_tmp = block_b * l_chunk * d_hidden * 4                    # one f32 hidden chunk
    logits = 3 * block_b * n_head * seq_len * 4                 # logits / exp / attn f32 temps
    return x_blk + out_blk + attn_blk + w1 + w2 + h_tmp + logits


def _pick_block_b(batch, seq_len, d_in, d_hidden, n_head, itemsize,
                  vmem_budget, dual_core, target_rows=2048):
    """Largest divisor of `batch` whose flattened row count stays near `target_rows`
    and whose VMEM footprint fits the budget. The '>= 2 grid steps' cap (and the
    preference for an even number of steps) only applies on dual-TensorCore parts."""
    cap = batch
    if dual_core and batch > 1:
        cap = max(1, batch // 2)
    candidates = []
    for d in range(1, batch + 1):
        if batch % d or d > cap:
            continue
        if d > 1 and d * seq_len > target_rows:
            continue
        lc = _choose_l_chunk(d, seq_len, d_hidden)
        if d > 1 and _vmem_bytes(d, seq_len, d_in, d_hidden, n_head, itemsize, lc) > vmem_budget:
            continue
        candidates.append(d)
    if not candidates:
        return 1
    if dual_core:
        even = [d for d in candidates if (batch // d) % 2 == 0]
        if even:
            return max(even)
    return max(candidates)


# ---------------------------------------------------------------------------------
# Wrapper
# ---------------------------------------------------------------------------------

def mhsa_forward(x, w1, w2, *, block_b=None):
    """x: (B, L, d_in), w1: (d_hidden, d_in), w2: (n_head, d_hidden)."""
    B, L, d_in = x.shape
    d_hidden, d_in_w = w1.shape
    n_head, d_hidden_w = w2.shape
    assert d_in_w == d_in and d_hidden_w == d_hidden

    itemsize = jnp.dtype(x.dtype).itemsize
    vmem_cap = _vmem_capacity_bytes()
    # Explicit scoped-VMEM sizing: stay well under physical capacity (64 MiB on v7x,
    # 128 MiB on v5e/v6e) and leave headroom for compiler-internal scratch.
    vmem_limit = max(16 << 20, min(int(vmem_cap * 0.85), vmem_cap - (8 << 20)))
    vmem_budget = int(vmem_limit * 0.85)
    dual_core = _is_dual_tensorcore()

    if block_b is None:
        block_b = _pick_block_b(B, L, d_in, d_hidden, n_head, itemsize,
                                vmem_budget, dual_core)
    assert B % block_b == 0
    grid_b = B // block_b
    l_chunk = _choose_l_chunk(block_b, L, d_hidden)

    # Hoist weight layout work out of the grid loop: one XLA transpose / cast total.
    w1t = w1.T.astype(x.dtype)      # (d_in, d_hidden)
    w2c = w2.astype(x.dtype)        # (n_head, d_hidden)

    # Exact reciprocal keeps the 1e-5 f32 tolerance; approx (EUP slot) when outputs
    # are sub-f32 anyway (error far below bf16 ulp).
    approx_recip = bool(jnp.dtype(x.dtype) != jnp.dtype(jnp.float32))

    flops = (2 * B * L * d_in * d_hidden
             + 2 * B * L * d_hidden * n_head
             + 2 * B * n_head * L * d_in)
    transcendentals = B * L * d_hidden + B * L * n_head
    bytes_accessed = ((B * L * d_in + d_in * d_hidden + n_head * d_hidden) * itemsize
                      + (B * n_head * d_in + B * n_head * L) * itemsize)

    kernel = functools.partial(_mhsa_kernel, l_chunk=l_chunk, approx_recip=approx_recip)

    out, attn_t = pl.pallas_call(
        kernel,
        out_shape=(
            jax.ShapeDtypeStruct((B, n_head, d_in), x.dtype),
            jax.ShapeDtypeStruct((B, n_head, L), x.dtype),   # lane-dense attn layout
        ),
        grid_spec=pltpu.PrefetchScalarGridSpec(
            num_scalar_prefetch=0,
            grid=(grid_b,),
            in_specs=[
                pl.BlockSpec((block_b, L, d_in), lambda b: (b, 0, 0)),
                # Constant index maps: weights are DMA'd once and stay resident.
                pl.BlockSpec((d_in, d_hidden), lambda b: (0, 0)),
                pl.BlockSpec((n_head, d_hidden), lambda b: (0, 0)),
            ],
            out_specs=[
                pl.BlockSpec((block_b, n_head, d_in), lambda b: (b, 0, 0)),
                pl.BlockSpec((block_b, n_head, L), lambda b: (b, 0, 0)),
            ],
        ),
        compiler_params=pltpu.CompilerParams(
            dimension_semantics=("parallel",),
            vmem_limit_bytes=int(vmem_limit),
        ),
        cost_estimate=pl.CostEstimate(
            flops=flops,
            transcendentals=transcendentals,
            bytes_accessed=bytes_accessed,
        ),
    )(x, w1t, w2c)

    # Back to the module's (B, L, n_head) attention layout (cheap XLA transpose).
    attn = jnp.transpose(attn_t, (0, 2, 1))
    if n_head == 1:
        out = jnp.squeeze(out, axis=1)  # matches torch `output.squeeze(1)` glue
    return out, attn


def _xavier_uniform(key, shape):
    # nn.init.xavier_uniform_ for a Linear weight of shape (fan_out, fan_in)
    fan_out, fan_in = shape
    bound = (6.0 / (fan_in + fan_out)) ** 0.5
    return jax.random.uniform(key, shape, jnp.float32, minval=-bound, maxval=bound)


if __name__ == "__main__":
    # Small shapes consistent with the module's forward
    B, L, d_in, d_hidden, n_head = 2, 8, 32, 32, 4

    key = jax.random.PRNGKey(0)
    kx, k1, k2 = jax.random.split(key, 3)

    x = jax.random.normal(kx, (B, L, d_in), jnp.float32)
    w1 = _xavier_uniform(k1, (d_hidden, d_in))    # w_1.weight
    w2 = _xavier_uniform(k2, (n_head, d_hidden))  # w_2.weight

    out, attn = mhsa_forward(x, w1, w2)
    out, attn = jax.block_until_ready(out), jax.block_until_ready(attn)

    # Pure-JAX reference check
    logits_ref = jnp.tanh(x @ w1.T) @ w2.T
    attn_ref = jax.nn.softmax(logits_ref, axis=1)
    out_ref = jnp.einsum("blh,bld->bhd", attn_ref, x)
    assert attn.shape == (B, L, n_head)
    assert out.shape == (B, n_head, d_in)
    assert jnp.allclose(attn, attn_ref, atol=1e-5), "attn mismatch"
    assert jnp.allclose(out, out_ref, atol=1e-5), "output mismatch"

    print("KERNEL_OK")
</pallas_src>

<mosaic_0001>
module attributes {stable_mosaic.version = 11 : i64} {
  func.func @_mhsa_kernel(%arg0: i32, %arg1: memref<2x8x32xf32, #tpu.memory_space<vmem>>, %arg2: memref<32x32xf32, #tpu.memory_space<vmem>>, %arg3: memref<4x32xf32, #tpu.memory_space<vmem>>, %arg4: memref<2x4x32xf32, #tpu.memory_space<vmem>>, %arg5: memref<2x4x8xf32, #tpu.memory_space<vmem>>) attributes {dimension_semantics = [#tpu.dimension_semantics<parallel>], iteration_bounds = array<i64: 1>, scalar_prefetch = 0 : i64, scratch_operands = 0 : i64, tpu.core_type = #tpu.core_type<tc>, window_params = [{transform_indices = @transform_0, window_bounds = array<i64: 2, 8, 32>}, {pipeline_mode = #tpu.pipeline_mode<synchronous>, transform_indices = @transform_1, window_bounds = array<i64: 32, 32>}, {pipeline_mode = #tpu.pipeline_mode<synchronous>, transform_indices = @transform_2, window_bounds = array<i64: 4, 32>}, {transform_indices = @transform_3, window_bounds = array<i64: 2, 4, 32>}, {transform_indices = @transform_4, window_bounds = array<i64: 2, 4, 8>}]} {
    %c0 = arith.constant 0 : index
    %c0_0 = arith.constant 0 : index
    %c0_1 = arith.constant 0 : index
    %0 = vector.load %arg1[%c0, %c0_0, %c0_1] : memref<2x8x32xf32, #tpu.memory_space<vmem>>, vector<2x8x32xf32>
    %c0_2 = arith.constant 0 : index
    %c0_3 = arith.constant 0 : index
    %1 = vector.load %arg2[%c0_2, %c0_3] : memref<32x32xf32, #tpu.memory_space<vmem>>, vector<32x32xf32>
    %c0_4 = arith.constant 0 : index
    %c0_5 = arith.constant 0 : index
    %2 = vector.load %arg3[%c0_4, %c0_5] : memref<4x32xf32, #tpu.memory_space<vmem>>, vector<4x32xf32>
    %3 = vector.shape_cast %0 : vector<2x8x32xf32> to vector<16x32xf32>
    %cst = arith.constant dense<0.000000e+00> : vector<16x32xf32>
    %4 = tpu.matmul %3, %1, %cst {dimension_numbers = #tpu.dot_dimension_numbers<[1], [0], [0], [1], [0, 0, 1, 1], [], []>} : vector<16x32xf32>, vector<32x32xf32>, vector<16x32xf32> -> vector<16x32xf32>
    %5 = math.tanh %4 : vector<16x32xf32>
    %cst_6 = arith.constant dense<0.000000e+00> : vector<4x16xf32>
    %6 = tpu.matmul %2, %5, %cst_6 {dimension_numbers = #tpu.dot_dimension_numbers<[1], [1], [0], [0], [0, 0, 1, 0], [], []>} : vector<4x32xf32>, vector<16x32xf32>, vector<4x16xf32> -> vector<4x16xf32>
    %7 = vector.shape_cast %6 : vector<4x16xf32> to vector<4x2x8xf32>
    %8 = tpu.transpose %7, [1, 0, 2] : vector<4x2x8xf32> -> vector<2x4x8xf32>
    %cst_7 = arith.constant dense<0xFF800000> : vector<2x4xf32>
    %9 = vector.multi_reduction <maximumf>, %8, %cst_7 [2] : vector<2x4x8xf32> to vector<2x4xf32>
    %10 = vector.shape_cast %9 : vector<2x4xf32> to vector<2x4x1xf32>
    %11 = vector.broadcast %10 : vector<2x4x1xf32> to vector<2x4x8xf32>
    %12 = arith.subf %8, %11 : vector<2x4x8xf32>
    %13 = math.exp %12 : vector<2x4x8xf32>
    %cst_8 = arith.constant dense<0.000000e+00> : vector<2x4xf32>
    %14 = vector.multi_reduction <add>, %13, %cst_8 [2] : vector<2x4x8xf32> to vector<2x4xf32>
    %15 = vector.shape_cast %14 : vector<2x4xf32> to vector<2x4x1xf32>
    %16 = tpu.reciprocal %15 : vector<2x4x1xf32> -> vector<2x4x1xf32>
    %17 = vector.broadcast %16 : vector<2x4x1xf32> to vector<2x4x8xf32>
    %18 = arith.mulf %13, %17 : vector<2x4x8xf32>
    %c0_9 = arith.constant 0 : index
    %c0_10 = arith.constant 0 : index
    %c0_11 = arith.constant 0 : index
    %19 = vector.load %arg5[%c0_9, %c0_10, %c0_11] : memref<2x4x8xf32, #tpu.memory_space<vmem>>, vector<2x4x8xf32>
    tpu.vector_store %arg5[%c0_9, %c0_10, %c0_11], %18 {strides = array<i32>} : memref<2x4x8xf32, #tpu.memory_space<vmem>>, vector<2x4x8xf32>,
    "tpu.trace_start"() <{level = 10 : i32, message = "bhl,bld->bhd"}> : () -> ()
    %cst_12 = arith.constant dense<0.000000e+00> : vector<2x4x32xf32>
    %20 = tpu.matmul %18, %0, %cst_12 {dimension_numbers = #tpu.dot_dimension_numbers<[2], [1], [1], [2], [0, 0, 0, 1, 1, 2], [0], [0]>} : vector<2x4x8xf32>, vector<2x8x32xf32>, vector<2x4x32xf32> -> vector<2x4x32xf32>
    "tpu.trace_stop"() : () -> ()
    %c0_13 = arith.constant 0 : index
    %c0_14 = arith.constant 0 : index
    %c0_15 = arith.constant 0 : index
    %21 = vector.load %arg4[%c0_13, %c0_14, %c0_15] : memref<2x4x32xf32, #tpu.memory_space<vmem>>, vector<2x4x32xf32>
    tpu.vector_store %arg4[%c0_13, %c0_14, %c0_15], %20 {strides = array<i32>} : memref<2x4x32xf32, #tpu.memory_space<vmem>>, vector<2x4x32xf32>,
    return
  }
  func.func @transform_0(%arg0: i32) -> (i32, i32, i32) {
    %c0_i32 = arith.constant 0 : i32
    %c0_i32_0 = arith.constant 0 : i32
    %c0_i32_1 = arith.constant 0 : i32
    return %arg0, %c0_i32, %c0_i32_0 : i32, i32, i32
  }
  func.func @transform_1(%arg0: i32) -> (i32, i32) {
    %c0_i32 = arith.constant 0 : i32
    %c0_i32_0 = arith.constant 0 : i32
    %c0_i32_1 = arith.constant 0 : i32
    return %c0_i32, %c0_i32_0 : i32, i32
  }
  func.func @transform_2(%arg0: i32) -> (i32, i32) {
    %c0_i32 = arith.constant 0 : i32
    %c0_i32_0 = arith.constant 0 : i32
    %c0_i32_1 = arith.constant 0 : i32
    return %c0_i32, %c0_i32_0 : i32, i32
  }
  func.func @transform_3(%arg0: i32) -> (i32, i32, i32) {
    %c0_i32 = arith.constant 0 : i32
    %c0_i32_0 = arith.constant 0 : i32
    %c0_i32_1 = arith.constant 0 : i32
    return %arg0, %c0_i32, %c0_i32_0 : i32, i32, i32
  }
  func.func @transform_4(%arg0: i32) -> (i32, i32, i32) {
    %c0_i32 = arith.constant 0 : i32
    %c0_i32_0 = arith.constant 0 : i32
    %c0_i32_1 = arith.constant 0 : i32
    return %arg0, %c0_i32, %c0_i32_0 : i32, i32, i32
  }
}

</mosaic_0001>

<bundles_post_ra>
// kernel: tpu_custom_call.1
= control target key start
LH: loop header
LB: loop body
LE: loop exit
PB: predicated region body
PF: predicated region fallthrough
CT: control target
= control target key end

     0   :  { %10 = vsyncpa [#allocation3], 0  ;;  %s543_s0 = inlined_call_operand.hbm [shape: f32[2,8,32], index: 0, kind: input, shape index: {}]   ;;  %s544_s1 = inlined_call_operand.hbm [shape: f32[32,32], index: 1, kind: input, shape index: {}]   ;;  %s545_s2 = inlined_call_operand.hbm [shape: f32[4,32], index: 2, kind: input, shape index: {}]   ;;  %s546_s3 = inlined_call_operand.hbm [shape: f32[2,4,32], index: 3, kind: output, shape index: {0}]   ;;  %s547_s4 = inlined_call_operand.hbm [shape: f32[2,4,8], index: 4, kind: output, shape index: {1}]  }
   0x1   :  { %11 = vsyncpa [#allocation6], 0 }
   0x2   :  { %12 = vsyncpa [#allocation4], 0 }
   0x3   :  { %13 = vsyncpa [#allocation10], 0  ;;  %s31_s17 = sshll.u32 %s544_s1, 4  ;;  %s477_s18 = smov [#allocation5]   ;;  %s32_s17 = int_to_ptr.hbm [resolvable:$true] %s31_s17 }
   0x4   :  { %s33_s19 = sshll.u32 %s477_s18, 4  ;;  %s18_s22 = sshll.u32 %s543_s0, 4  ;;  %s34_s19 = int_to_ptr.vmem [resolvable:$true] %s33_s19  ;;  %s19_s22 = int_to_ptr.hbm [resolvable:$true] %s18_s22 }
   0x5   :  { %s478_s23 = smov 128   ;;  %s479_s24 = smov 8  }
   0x6   :  { %39 = dma.hbm_to_vmem [thread:$0]  %s32_s17, 512, %s34_s19, [#allocation6], %s478_s23, %s478_s23, %s479_s24  }
   0x7   :  { %s480_s25 = smov [#allocation2]   ;;  %s45_s29 = sshll.u32 %s545_s2, 4  ;;  %s46_s29 = int_to_ptr.hbm [resolvable:$true] %s45_s29 }
   0x8   :  { %s20_s26 = sshll.u32 %s480_s25, 4  ;;  %s481_s1 = smov [#allocation7]   ;;  %s21_s26 = int_to_ptr.vmem [resolvable:$true] %s20_s26 }
   0x9   :  { %26 = dma.hbm_to_vmem [thread:$0]  %s19_s22, 256, %s21_s26, [#allocation3], %s478_s23, %s478_s23, %s479_s24  }
   0xa   :  { %s47_s30 = sshll.u32 %s481_s1, 4  ;;  %s48_s30 = int_to_ptr.vmem [resolvable:$true] %s47_s30 }
   0xb   :  { %50 = dma.hbm_to_vmem [thread:$0]  %s46_s29, 64, %s48_s30, [#allocation6]  }
   0xc   :  { %469 = dma.done.wait [#allocation3], 256  }
   0xd   :  { %470 = vsyncadd [#allocation3], 4294967040 }
   0xe   :  { %471 = dma.done.wait [#allocation6], 576  }
   0xf   :  { %472 = vsyncadd [#allocation6], 4294966720  ;;  %v68_v0 = vld [vmem:[#allocation5 + $0x18] sm:$0xff]  ;;  %v67_v1 = vld [vmem:[#allocation5 + $0x10] sm:$0xff]  ;;  %vm70_vm0 = vcmask 261120   ;;  %s482_s0 = smov 120  }
  0x10   :  { %89 = vmatpush.msra.mxu0 %v68_v0  ;;  %v63_v2 = vld [vmem:[#allocation2] sm:$0xff]  ;;  %v64_v3 = vld [vmem:[#allocation2 + $0x8] sm:$0xff]  ;;  %v66_v4 = vld [vmem:[#allocation5 + $0x8] sm:$0xff]  ;;  %v483_v12 = vmov 1983009808   ;;  %vm144_vm1 = vcmask 1047556  }
  0x11   :  { %249 = vmatpush.msra.mxu2 %v63_v2  ;;  %272 = vmatpush.msra.mxu3 %v64_v3  ;;  %v65_v5 = vld [vmem:[#allocation5] sm:$0xff]  ;;  %v135_v13 = vunpack.c.l.s4 %v483_v12  ;;  %v484_v15 = vmov 1934713408   ;;  %vm179_vm2 = vcmask 60416   ;;  %vm230_vm9 = vcmask 64512   ;;  %s485_s2 = smov [#allocation9]  }
  0x12   :  { %90 = vmatpush.msra.mxu0 %v67_v1  ;;  %v69_v10 = vld [vmem:[#allocation7] sm:$0xf]  ;;  %v149_v16 = vunpack.c.l.s4 %v484_v15  ;;  %s297_s5 = sshll.u32 %s485_s2, 4  ;;  %s299_s8 = sshll.u32 %s547_s4, 4  ;;  %vm277_vm12 = vcmask 257024   ;;  %s298_s5 = int_to_ptr.vmem [resolvable:$true] %s297_s5  ;;  %s300_s8 = int_to_ptr.hbm [resolvable:$true] %s299_s8 }
  0x13   :  { %v136_v14 = vunpack.c.0.s8 %v135_v13  ;;  %s486_s9 = smov 64   ;;  %s487_s10 = smov 4  }
  0x14   :  { %91 = vmatpush.msra.mxu0 %v66_v4  ;;  %v150_v18 = vunpack.c.0.s8 %v149_v16  ;;  %s488_s11 = smov [#allocation8]   ;;  %s286_s15 = sshll.u32 %s546_s3, 4  ;;  %s287_s15 = int_to_ptr.hbm [resolvable:$true] %s286_s15 }
  0x15   :  { %s284_s12 = sshll.u32 %s488_s11, 4  ;;  %s285_s12 = int_to_ptr.vmem [resolvable:$true] %s284_s12 }
  0x16   :  { %92 = vmatpush.msra.mxu0 %v65_v5 }
  0x17   :  { %318 = vmatmul.msk.f32.vlgmr.msra.gmra.mxu0 %vm70_vm0, %v63_v2 }
  0x1f   :  { %319 = vmatmul.msk.f32.gmra.mxu0 %vm70_vm0, %v64_v3 }
  0x94   :  { %v94_v6 = vpop.f32.mrf.mxu0 }
  0x9c   :  { %v97_v7 = vpop.f32.mrf.mxu0 }
  0x9d   :  { %337 = vtanh.f32 %v97_v7 }
  0x9e   :  { %339 = vtanh.f32 %v94_v6 }
  0xa3   :  { %v338_v8 = vpop.eup %337 }
  0xa4   :  { %320 = vmatpush.xpose.msk.msra.mxu1 %vm70_vm0, %v338_v8  ;;  %v340_v9 = vpop.eup %339 }
  0xa8   :  { %321 = vmatpush.xpose.msk.msra.mxu1 %vm70_vm0, %v340_v9 }
  0xab   :  { %322 = vmatmul.msk.f32.vlgmr.msra.gmra.mxu1 %vm70_vm0, %v69_v10 }
 0x128   :  { %v128_v11 = vpop.f32.mrf.mxu1 }
 0x129   :  { %132 = vrot.lane.b32.xlu0 %v128_v11, %s482_s0  ;;  %v137_v17 = vperm.slane %v128_v11, %v136_v14 }
 0x12b   :  { %v146_v20 = vrot.slane %v137_v17, 4 }
 0x19b   :  { %v133_v19 = vpop.permute.xlu0 %132 }
 0x19c   :  { %v142_v21 = vperm.slane %v133_v19, %v136_v14 }
 0x19e   :  { %v143_v22 = vrot.slane %v142_v21, 4  ;;  %v147_v23 = vsel %vm144_vm1, %v142_v21, %v146_v20 }
 0x19f   :  { %v155_v24 = vperm.slane %v147_v23, %v150_v18 }
 0x1a0   :  { %v145_v25 = vsel %vm144_vm1, %v143_v22, %v137_v17 }
 0x1a1   :  { %v151_v26 = vperm.slane %v145_v25, %v150_v18  ;;  %v158_v27 = vrot.slane %v155_v24, 4 }
 0x1a3   :  { %v156_v28 = vrot.slane %v151_v26, 4  ;;  %v159_v29 = vsel %vm144_vm1, 0.0, %v158_v27  ;;  %v160_v32 = vsel %vm144_vm1, %v158_v27, %v151_v26 }
 0x1a4   :  { %v165_v30 = vrot.slane %v159_v29, 4  ;;  %v164_v35 = vperm.slane %v160_v32, %v136_v14 }
 0x1a5   :  { %v157_v31 = vsel %vm144_vm1, 0.0, %v156_v28 }
 0x1a6   :  { %v166_v33 = vsel %vm144_vm1, %v165_v30, %v157_v31 }
 0x1a7   :  { %v170_v34 = vperm.slane %v166_v33, %v136_v14 }
 0x1a9   :  { %v171_v36 = vrot.slane %v170_v34, 4 }
 0x1ab   :  { %v172_v37 = vsel %vm144_vm1, %v171_v36, %v164_v35 }
 0x1ac   :  { %v176_v38 = vperm.slane %v172_v37, %v150_v18 }
 0x1ae   :  { %v180_v39 = vsel %vm179_vm2, %v176_v38, -inf  ;;  %v177_v40 = vrot.slane %v176_v38, 4 }
 0x1af   :  { %181 = vmax.xlane.f32.xlu0 %v180_v39 }
 0x1b0   :  { %v178_v41 = vsel %vm144_vm1, 0.0, %v177_v40 }
 0x1b1   :  { %v183_v42 = vsel %vm179_vm2, %v178_v41, -inf }
 0x1b2   :  { %184 = vmax.xlane.f32.xlu1 %v183_v42 }
 0x222   :  { %v182_v43 = vpop.xlane.xlu0 %181 }
 0x223   :  { %v186_v44 = vsub.f32 %v176_v38, %v182_v43 }
 0x225   :  { %v188_v45 = vmul.f32 1.442695, %v186_v44  ;;  %v185_v46 = vpop.xlane.xlu1 %184 }
 0x226   :  { %v187_v47 = vsub.f32 %v178_v41, %v185_v46 }
 0x227   :  { %341 = vpow2.f32 %v188_v45 }
 0x228   :  { %v190_v48 = vmul.f32 1.442695, %v187_v47 }
 0x22a   :  { %343 = vpow2.f32 %v190_v48 }
 0x22d   :  { %v342_v49 = vpop.eup %341 }
 0x22e   :  { %v192_v50 = vsel %vm179_vm2, %v342_v49, 0.0 }
 0x22f   :  { %193 = vadd.xlane.f32.xlu1 %v192_v50 }
 0x230   :  { %v344_v51 = vpop.eup %343 }
 0x231   :  { %v195_v52 = vsel %vm179_vm2, %v344_v51, 0.0 }
 0x232   :  { %196 = vadd.xlane.f32.xlu2 %v195_v52 }
 0x2a2   :  { %v194_v53 = vpop.xlane.xlu1 %193 }
 0x2a3   :  { %345 = vrcp.f32 %v194_v53  ;;  %v209_v59 = vand.u32 2147483648, %v194_v53  ;;  %v207_v62 = vand.u32 2147483647, %v194_v53  ;;  %vm203_vm4 = vweird.f32 %v194_v53 }
 0x2a5   :  { %v197_v54 = vpop.xlane.xlu2 %196  ;;  %v210_v2 = vor.u32 1.1754944e-38, %v209_v59  ;;  %vm208_vm7 = vcmp.eq.f32.partialorder %v207_v62, 8.507059e+37 }
 0x2a6   :  { %347 = vrcp.f32 %v197_v54  ;;  %v223_v1 = vand.u32 2147483648, %v197_v54  ;;  %v221_v4 = vand.u32 2147483647, %v197_v54  ;;  %vm217_vm8 = vweird.f32 %v197_v54 }
 0x2a8   :  { %v224_v8 = vor.u32 1.1754944e-38, %v223_v1  ;;  %vm222_vm11 = vcmp.eq.f32.partialorder %v221_v4, 8.507059e+37 }
 0x2a9   :  { %v346_v55 = vpop.eup %345 }
 0x2aa   :  { %v199_v56 = vmul.f32 %v346_v55, %v194_v53  ;;  %vm204_vm3 = vweird.f32 %v346_v55 }
 0x2ab   :  { %vm205_vm5 = vmor %vm203_vm4, %vm204_vm3 }
 0x2ac   :  { %v348_v57 = vpop.eup %347  ;;  %v200_v58 = vsub.f32 1.0, %v199_v56 }
 0x2ad   :  { %v213_v60 = vmul.f32 %v348_v57, %v197_v54  ;;  %vm218_vm6 = vweird.f32 %v348_v57 }
 0x2ae   :  { %v201_v61 = vmul.f32 %v346_v55, %v200_v58  ;;  %vm219_vm10 = vmor %vm217_vm8, %vm218_vm6 }
 0x2af   :  { %v214_v63 = vsub.f32 1.0, %v213_v60 }
 0x2b0   :  { %v202_v0 = vadd.f32 %v346_v55, %v201_v61 }
 0x2b1   :  { %v215_v3 = vmul.f32 %v348_v57, %v214_v63 }
 0x2b2   :  { %v206_v5 = vsel %vm205_vm5, %v346_v55, %v202_v0 }
 0x2b3   :  { %v216_v6 = vadd.f32 %v348_v57, %v215_v3  ;;  %v211_v7 = vsel %vm208_vm7, %v210_v2, %v206_v5 }
 0x2b4   :  { %v226_v9 = vmul.f32 %v342_v49, %v211_v7 }
 0x2b5   :  { %v220_v10 = vsel %vm219_vm10, %v348_v57, %v216_v6 }
 0x2b6   :  { %228 = vst.msk [vmem:[#allocation9] sm:$0xf] %vm179_vm2, %v226_v9  ;;  %323 = vmatmul.msk.f32.vlgmr.msra.gmra.mxu2 %vm230_vm9, %v226_v9  ;;  %v225_v11 = vsel %vm222_vm11, %v224_v8, %v220_v10 }
 0x2b7   :  { %v227_v12 = vmul.f32 %v344_v51, %v225_v11 }
 0x2b9   :  { %229 = vst.msk [vmem:[#allocation9 + $0x4] sm:$0xf] %vm179_vm2, %v227_v12  ;;  %324 = vmatmul.msk.f32.vlgmr.msra.gmra.mxu3 %vm230_vm9, %v227_v12 }
 0x2ba   :  { %305 = dma.vmem_to_hbm [thread:$0]  %s298_s5, 128, %s300_s8, [#allocation10], %s486_s9, %s486_s9, %s487_s10  }
 0x339   :  { %v251_v13 = vpop.f32.mrf.mxu2 }
 0x33a   :  { %278 = vst.msk [vmem:[#allocation8] sm:$0xf] %vm277_vm12, %v251_v13 }
 0x33c   :  { %v274_v14 = vpop.f32.mrf.mxu3 }
 0x33d   :  { %279 = vst.msk [vmem:[#allocation8 + $0x4] sm:$0xf] %vm277_vm12, %v274_v14 }
 0x33e   :  { %292 = dma.vmem_to_hbm [thread:$0]  %s285_s12, 128, %s287_s15, [#allocation4], %s486_s9, %s486_s9, %s487_s10  }
 0x33f   :  { %473 = dma.done.wait [#allocation4], 128  }
 0x340   :  { %474 = vsyncadd [#allocation4], 4294967168 }
 0x341   :  { %475 = dma.done.wait [#allocation10], 128  }
 0x342   :  { %476 = vsyncadd [#allocation10], 4294967168 }
 0x343   :  { %314 = vsyncpa [#allocation3], 1 }
 0x344   :  { %315 = vsyncpa [#allocation6], 1 }
 0x345   :  { %316 = vsyncpa [#allocation4], 1 }
 0x346   :  { %317 = vsyncpa [#allocation10], 1 }

</bundles_post_ra>
